<compile_context>
chip_gen: v5e
topology: v5e:2x2
jax: 0.10.0
libtpu: 0.0.40
codegen_flags: <defaults>
</compile_context>

<pallas_src>
import jax
import jax.numpy as jnp
from jax.experimental import pallas as pl
from jax.experimental.pallas import tpu as pltpu

EPS = 1e-5
H3_PAD = 128    # third hidden layer padded 64 -> 128 (lane-dense)
OUT_PAD = 128   # class_num padded to a lane-dense output slab


def _round_up(a, m):
    return (a + m - 1) // m * m


# --------------------------------------------------------------------------- #
# Kernel
# --------------------------------------------------------------------------- #
def mymlp_kernel(
    x_ref,
    w1_ref, b1_ref,
    w2_ref, b2_ref,
    w3_ref, b3_ref,
    w4_ref, b4_ref,
    o_ref,
):
    def stage(h_bf16, w_ref, b_ref):
        # bf16 x bf16 on the MXU with f32 accumulation; bias add stays f32
        # (v5e has no bf16 VPU path; on v6e/v7x the tanh/bias could optionally
        # run in bf16 for ~2x EUP/VPU throughput).
        return jnp.dot(h_bf16, w_ref[...],
                       preferred_element_type=jnp.float32) + b_ref[...]

    # Cast the raw f32 input tile to bf16 in-kernel (free on the VPU) instead
    # of a separate wrapper-side pad+cast pass over HBM.
    x_bf16 = x_ref[...].astype(jnp.bfloat16)                           # [TB, 508]

    h = jnp.tanh(stage(x_bf16, w1_ref, b1_ref))                        # [TB, 256]
    h = jnp.tanh(stage(h.astype(jnp.bfloat16), w2_ref, b2_ref))        # [TB, 128]
    h = jnp.tanh(stage(h.astype(jnp.bfloat16), w3_ref, b3_ref))        # [TB, 128] (64 real)
    # TODO(synk): Dropout(0.25) is identity in eval mode; training-mode dropout
    # (pltpu.prng_random_bits mask) intentionally not implemented here.
    h = stage(h.astype(jnp.bfloat16), w4_ref, b4_ref)                  # [TB, 128]
    o_ref[...] = h.astype(o_ref.dtype)


# --------------------------------------------------------------------------- #
# Parameter folding (BatchNorm + bias -> weights), padding, dtype prep
# --------------------------------------------------------------------------- #
def fold_params(raw_params):
    """raw_params: (w,b,gamma,beta,mean,var) x3 + (w4,b4), weights as [in,out].

    Returns 8 arrays: bf16 weights and f32 biases, matching the kernel
    signature after x. Layer 3 is zero-padded 64 -> 128 and layer 4 output to
    OUT_PAD (exactly equivalent since tanh(0)=0 and padded w4 rows are zero).
    """
    p = list(raw_params)
    folded = []
    for layer_idx in range(3):
        w, b, g, be, m, v = p[:6]
        p = p[6:]
        scale = g * jax.lax.rsqrt(v + EPS)            # (1, out)
        w_f = w * scale                               # fold BN scale into columns
        b_f = (b - m) * scale + be                    # fold bias + BN shift
        if layer_idx == 2:                            # pad N: 64 -> 128 (zero cols)
            w_f = jnp.pad(w_f, ((0, 0), (0, H3_PAD - w_f.shape[1])))
            b_f = jnp.pad(b_f, ((0, 0), (0, H3_PAD - b_f.shape[1])))
        folded += [w_f.astype(jnp.bfloat16), b_f.astype(jnp.float32)]

    w4, b4 = p
    class_num = w4.shape[1]
    assert class_num <= OUT_PAD
    w4 = jnp.pad(w4, ((0, H3_PAD - w4.shape[0]), (0, OUT_PAD - class_num)))
    b4 = jnp.pad(b4, ((0, 0), (0, OUT_PAD - class_num)))
    folded += [w4.astype(jnp.bfloat16), b4.astype(jnp.float32)]
    return tuple(folded)


# --------------------------------------------------------------------------- #
# Wrapper
# --------------------------------------------------------------------------- #
def mymlp_forward(x, folded, class_num, *, tile_b=1024):
    B, F = x.shape
    h1 = folded[0].shape[1]
    h2 = folded[2].shape[1]
    h3 = folded[4].shape[1]

    # Batch tile: big (amortizes ~0.35us/step + MXU weight pushes), multiple of
    # 16 sublanes, and capped so the grid has >=2 steps when B allows it
    # (v7x megacore sharding via "parallel" semantics). Last tile may be
    # partial (pl.cdiv grid; OOB rows masked by Pallas and sliced off below).
    tb = min(tile_b,
             max(16, _round_up(pl.cdiv(B, 2), 16)),
             _round_up(B, 16))
    grid = (pl.cdiv(B, tb),)

    x_spec = pl.BlockSpec((tb, F), lambda i: (i, 0))          # F=508 == full dim
    out_spec = pl.BlockSpec((tb, OUT_PAD), lambda i: (i, 0))
    # Weights/biases: full-array blocks with a constant index_map -> stay
    # VMEM-resident across grid steps (~0.4 MiB total).
    param_specs = [pl.BlockSpec(p.shape, lambda i: (0, 0)) for p in folded]

    flops = 2 * B * (F * h1 + h1 * h2 + h2 * h3 + h3 * OUT_PAD)
    transcendentals = B * (h1 + h2 + h3)
    bytes_accessed = (x.size * x.dtype.itemsize + B * OUT_PAD * 2
                      + sum(int(p.size) * p.dtype.itemsize for p in folded))

    out = pl.pallas_call(
        mymlp_kernel,
        out_shape=jax.ShapeDtypeStruct((B, OUT_PAD), jnp.bfloat16),
        grid=grid,
        in_specs=[x_spec] + param_specs,
        out_specs=out_spec,
        compiler_params=pltpu.CompilerParams(
            dimension_semantics=("parallel",)),   # megacore sharding on v7x
        cost_estimate=pl.CostEstimate(
            flops=flops,
            transcendentals=transcendentals,
            bytes_accessed=bytes_accessed),
    )(x, *folded)

    return out[:, :class_num]


# --------------------------------------------------------------------------- #
# Synthetic parameters + references
# --------------------------------------------------------------------------- #
def init_raw_params(key, class_num):
    """Deterministic synthetic parameters (PyTorch layer shapes, [in,out] weights)."""
    dims = [(508, 256), (256, 128), (128, 64), (64, class_num)]
    keys = jax.random.split(key, 3 * 6 + 2)
    ki = iter(keys)

    params = []
    for din, dout in dims[:3]:
        w = jax.random.normal(next(ki), (din, dout), jnp.float32) / (din ** 0.5)
        b = 0.01 * jax.random.normal(next(ki), (1, dout), jnp.float32)
        gamma = 1.0 + 0.1 * jax.random.normal(next(ki), (1, dout), jnp.float32)
        beta = 0.1 * jax.random.normal(next(ki), (1, dout), jnp.float32)
        rmean = 0.1 * jax.random.normal(next(ki), (1, dout), jnp.float32)
        rvar = 1.0 + 0.1 * jnp.abs(jax.random.normal(next(ki), (1, dout), jnp.float32))
        params += [w, b, gamma, beta, rmean, rvar]
    din, dout = dims[3]
    params += [jax.random.normal(next(ki), (din, dout), jnp.float32) / (din ** 0.5),
               0.01 * jax.random.normal(next(ki), (1, dout), jnp.float32)]
    return tuple(params)


def mymlp_reference_f32(x, raw_params):
    """Pure-f32 reference reproducing the PyTorch eval-mode forward exactly."""
    p = list(raw_params)
    h = x.astype(jnp.float32)
    for _ in range(3):
        w, b, g, be, m, v = p[:6]
        p = p[6:]
        h = h @ w + b
        h = (h - m) * jax.lax.rsqrt(v + EPS) * g + be
        h = jnp.tanh(h)
    w4, b4 = p
    return h @ w4 + b4


def mymlp_reference_folded(x, folded, class_num):
    """Pure-JAX reference with the same folding / padding / bf16 casts as the kernel."""
    w1, b1, w2, b2, w3, b3, w4, b4 = folded
    h = x.astype(jnp.bfloat16)
    h = jnp.tanh(jnp.dot(h, w1, preferred_element_type=jnp.float32) + b1)
    h = jnp.tanh(jnp.dot(h.astype(jnp.bfloat16), w2, preferred_element_type=jnp.float32) + b2)
    h = jnp.tanh(jnp.dot(h.astype(jnp.bfloat16), w3, preferred_element_type=jnp.float32) + b3)
    h = jnp.dot(h.astype(jnp.bfloat16), w4, preferred_element_type=jnp.float32) + b4
    return h.astype(jnp.bfloat16)[:, :class_num]


if __name__ == "__main__":
    B = 8
    CLASS_NUM = 5

    key = jax.random.PRNGKey(0)
    kx, kp = jax.random.split(key)
    x = jax.random.normal(kx, (B, 508), jnp.float32)

    raw_params = init_raw_params(kp, CLASS_NUM)
    folded_params = fold_params(raw_params)

    out = mymlp_forward(x, folded_params, CLASS_NUM)
    out = jax.block_until_ready(out)
    assert out.shape == (B, CLASS_NUM)

    out_f32 = out.astype(jnp.float32)

    # Tight check against a reference with identical bf16/folding numerics
    # (tolerance covers 1-2 bf16 ulps from accumulation-order differences).
    ref_matched = mymlp_reference_folded(x, folded_params, CLASS_NUM).astype(jnp.float32)
    assert jnp.max(jnp.abs(out_f32 - ref_matched)) < 3e-2, "mismatch vs folded bf16 reference"

    # Sanity check against the exact f32 module semantics (looser: bf16 matmuls + bf16 output).
    ref_f32 = mymlp_reference_f32(x, raw_params)
    assert jnp.max(jnp.abs(out_f32 - ref_f32)) < 1e-1, "mismatch vs f32 module reference"

    print("KERNEL_OK")
</pallas_src>

<mosaic_0001>
module attributes {stable_mosaic.version = 11 : i64} {
  func.func @mymlp_kernel(%arg0: i32, %arg1: memref<16x508xf32, #tpu.memory_space<vmem>>, %arg2: memref<508x256xbf16, #tpu.memory_space<vmem>>, %arg3: memref<1x256xf32, #tpu.memory_space<vmem>>, %arg4: memref<256x128xbf16, #tpu.memory_space<vmem>>, %arg5: memref<1x128xf32, #tpu.memory_space<vmem>>, %arg6: memref<128x128xbf16, #tpu.memory_space<vmem>>, %arg7: memref<1x128xf32, #tpu.memory_space<vmem>>, %arg8: memref<128x128xbf16, #tpu.memory_space<vmem>>, %arg9: memref<1x128xf32, #tpu.memory_space<vmem>>, %arg10: memref<16x128xbf16, #tpu.memory_space<vmem>>) attributes {dimension_semantics = [#tpu.dimension_semantics<parallel>], iteration_bounds = array<i64: 1>, scalar_prefetch = 0 : i64, scratch_operands = 0 : i64, tpu.core_type = #tpu.core_type<tc>, window_params = [{transform_indices = @transform_0, window_bounds = array<i64: 16, 508>}, {pipeline_mode = #tpu.pipeline_mode<synchronous>, transform_indices = @transform_1, window_bounds = array<i64: 508, 256>}, {pipeline_mode = #tpu.pipeline_mode<synchronous>, transform_indices = @transform_2, window_bounds = array<i64: 1, 256>}, {pipeline_mode = #tpu.pipeline_mode<synchronous>, transform_indices = @transform_3, window_bounds = array<i64: 256, 128>}, {pipeline_mode = #tpu.pipeline_mode<synchronous>, transform_indices = @transform_4, window_bounds = array<i64: 1, 128>}, {pipeline_mode = #tpu.pipeline_mode<synchronous>, transform_indices = @transform_5, window_bounds = array<i64: 128, 128>}, {pipeline_mode = #tpu.pipeline_mode<synchronous>, transform_indices = @transform_6, window_bounds = array<i64: 1, 128>}, {pipeline_mode = #tpu.pipeline_mode<synchronous>, transform_indices = @transform_7, window_bounds = array<i64: 128, 128>}, {pipeline_mode = #tpu.pipeline_mode<synchronous>, transform_indices = @transform_8, window_bounds = array<i64: 1, 128>}, {transform_indices = @transform_9, window_bounds = array<i64: 16, 128>}]} {
    %c0 = arith.constant 0 : index
    %c0_0 = arith.constant 0 : index
    %0 = vector.load %arg1[%c0, %c0_0] : memref<16x508xf32, #tpu.memory_space<vmem>>, vector<16x508xf32>
    %1 = arith.truncf %0 : vector<16x508xf32> to vector<16x508xbf16>
    %c0_1 = arith.constant 0 : index
    %c0_2 = arith.constant 0 : index
    %2 = vector.load %arg2[%c0_1, %c0_2] : memref<508x256xbf16, #tpu.memory_space<vmem>>, vector<508x256xbf16>
    %cst = arith.constant dense<0.000000e+00> : vector<16x256xf32>
    %3 = tpu.matmul %1, %2, %cst {dimension_numbers = #tpu.dot_dimension_numbers<[1], [0], [0], [1], [0, 0, 1, 1], [], []>} : vector<16x508xbf16>, vector<508x256xbf16>, vector<16x256xf32> -> vector<16x256xf32>
    %c0_3 = arith.constant 0 : index
    %c0_4 = arith.constant 0 : index
    %4 = vector.load %arg3[%c0_3, %c0_4] : memref<1x256xf32, #tpu.memory_space<vmem>>, vector<1x256xf32>
    %5 = vector.broadcast %4 : vector<1x256xf32> to vector<16x256xf32>
    %6 = arith.addf %3, %5 : vector<16x256xf32>
    %7 = math.tanh %6 : vector<16x256xf32>
    %8 = arith.truncf %7 : vector<16x256xf32> to vector<16x256xbf16>
    %c0_5 = arith.constant 0 : index
    %c0_6 = arith.constant 0 : index
    %9 = vector.load %arg4[%c0_5, %c0_6] : memref<256x128xbf16, #tpu.memory_space<vmem>>, vector<256x128xbf16>
    %cst_7 = arith.constant dense<0.000000e+00> : vector<16x128xf32>
    %10 = tpu.matmul %8, %9, %cst_7 {dimension_numbers = #tpu.dot_dimension_numbers<[1], [0], [0], [1], [0, 0, 1, 1], [], []>} : vector<16x256xbf16>, vector<256x128xbf16>, vector<16x128xf32> -> vector<16x128xf32>
    %c0_8 = arith.constant 0 : index
    %c0_9 = arith.constant 0 : index
    %11 = vector.load %arg5[%c0_8, %c0_9] : memref<1x128xf32, #tpu.memory_space<vmem>>, vector<1x128xf32>
    %12 = vector.broadcast %11 : vector<1x128xf32> to vector<16x128xf32>
    %13 = arith.addf %10, %12 : vector<16x128xf32>
    %14 = math.tanh %13 : vector<16x128xf32>
    %15 = arith.truncf %14 : vector<16x128xf32> to vector<16x128xbf16>
    %c0_10 = arith.constant 0 : index
    %c0_11 = arith.constant 0 : index
    %16 = vector.load %arg6[%c0_10, %c0_11] : memref<128x128xbf16, #tpu.memory_space<vmem>>, vector<128x128xbf16>
    %cst_12 = arith.constant dense<0.000000e+00> : vector<16x128xf32>
    %17 = tpu.matmul %15, %16, %cst_12 {dimension_numbers = #tpu.dot_dimension_numbers<[1], [0], [0], [1], [0, 0, 1, 1], [], []>} : vector<16x128xbf16>, vector<128x128xbf16>, vector<16x128xf32> -> vector<16x128xf32>
    %c0_13 = arith.constant 0 : index
    %c0_14 = arith.constant 0 : index
    %18 = vector.load %arg7[%c0_13, %c0_14] : memref<1x128xf32, #tpu.memory_space<vmem>>, vector<1x128xf32>
    %19 = vector.broadcast %18 : vector<1x128xf32> to vector<16x128xf32>
    %20 = arith.addf %17, %19 : vector<16x128xf32>
    %21 = math.tanh %20 : vector<16x128xf32>
    %22 = arith.truncf %21 : vector<16x128xf32> to vector<16x128xbf16>
    %c0_15 = arith.constant 0 : index
    %c0_16 = arith.constant 0 : index
    %23 = vector.load %arg8[%c0_15, %c0_16] : memref<128x128xbf16, #tpu.memory_space<vmem>>, vector<128x128xbf16>
    %cst_17 = arith.constant dense<0.000000e+00> : vector<16x128xf32>
    %24 = tpu.matmul %22, %23, %cst_17 {dimension_numbers = #tpu.dot_dimension_numbers<[1], [0], [0], [1], [0, 0, 1, 1], [], []>} : vector<16x128xbf16>, vector<128x128xbf16>, vector<16x128xf32> -> vector<16x128xf32>
    %c0_18 = arith.constant 0 : index
    %c0_19 = arith.constant 0 : index
    %25 = vector.load %arg9[%c0_18, %c0_19] : memref<1x128xf32, #tpu.memory_space<vmem>>, vector<1x128xf32>
    %26 = vector.broadcast %25 : vector<1x128xf32> to vector<16x128xf32>
    %27 = arith.addf %24, %26 : vector<16x128xf32>
    %28 = arith.truncf %27 : vector<16x128xf32> to vector<16x128xbf16>
    %c0_20 = arith.constant 0 : index
    %c0_21 = arith.constant 0 : index
    %29 = vector.load %arg10[%c0_20, %c0_21] : memref<16x128xbf16, #tpu.memory_space<vmem>>, vector<16x128xbf16>
    tpu.vector_store %arg10[%c0_20, %c0_21], %28 {strides = array<i32>} : memref<16x128xbf16, #tpu.memory_space<vmem>>, vector<16x128xbf16>,
    return
  }
  func.func @transform_0(%arg0: i32) -> (i32, i32) {
    %c0_i32 = arith.constant 0 : i32
    %c0_i32_0 = arith.constant 0 : i32
    return %arg0, %c0_i32 : i32, i32
  }
  func.func @transform_1(%arg0: i32) -> (i32, i32) {
    %c0_i32 = arith.constant 0 : i32
    %c0_i32_0 = arith.constant 0 : i32
    %c0_i32_1 = arith.constant 0 : i32
    return %c0_i32, %c0_i32_0 : i32, i32
  }
  func.func @transform_2(%arg0: i32) -> (i32, i32) {
    %c0_i32 = arith.constant 0 : i32
    %c0_i32_0 = arith.constant 0 : i32
    %c0_i32_1 = arith.constant 0 : i32
    return %c0_i32, %c0_i32_0 : i32, i32
  }
  func.func @transform_3(%arg0: i32) -> (i32, i32) {
    %c0_i32 = arith.constant 0 : i32
    %c0_i32_0 = arith.constant 0 : i32
    %c0_i32_1 = arith.constant 0 : i32
    return %c0_i32, %c0_i32_0 : i32, i32
  }
  func.func @transform_4(%arg0: i32) -> (i32, i32) {
    %c0_i32 = arith.constant 0 : i32
    %c0_i32_0 = arith.constant 0 : i32
    %c0_i32_1 = arith.constant 0 : i32
    return %c0_i32, %c0_i32_0 : i32, i32
  }
  func.func @transform_5(%arg0: i32) -> (i32, i32) {
    %c0_i32 = arith.constant 0 : i32
    %c0_i32_0 = arith.constant 0 : i32
    %c0_i32_1 = arith.constant 0 : i32
    return %c0_i32, %c0_i32_0 : i32, i32
  }
  func.func @transform_6(%arg0: i32) -> (i32, i32) {
    %c0_i32 = arith.constant 0 : i32
    %c0_i32_0 = arith.constant 0 : i32
    %c0_i32_1 = arith.constant 0 : i32
    return %c0_i32, %c0_i32_0 : i32, i32
  }
  func.func @transform_7(%arg0: i32) -> (i32, i32) {
    %c0_i32 = arith.constant 0 : i32
    %c0_i32_0 = arith.constant 0 : i32
    %c0_i32_1 = arith.constant 0 : i32
    return %c0_i32, %c0_i32_0 : i32, i32
  }
  func.func @transform_8(%arg0: i32) -> (i32, i32) {
    %c0_i32 = arith.constant 0 : i32
    %c0_i32_0 = arith.constant 0 : i32
    %c0_i32_1 = arith.constant 0 : i32
    return %c0_i32, %c0_i32_0 : i32, i32
  }
  func.func @transform_9(%arg0: i32) -> (i32, i32) {
    %c0_i32 = arith.constant 0 : i32
    %c0_i32_0 = arith.constant 0 : i32
    return %arg0, %c0_i32 : i32, i32
  }
}

</mosaic_0001>

<bundles_post_ra>
// kernel: tpu_custom_call.1
= control target key start
LH: loop header
LB: loop body
LE: loop exit
PB: predicated region body
PF: predicated region fallthrough
CT: control target
= control target key end

     0   :  { %14 = vsyncpa [#allocation3], 0  ;;  %s1832_s0 = inlined_call_operand.hbm [shape: f32[8,508], index: 0, kind: input, shape index: {}]   ;;  %s1833_s1 = inlined_call_operand.hbm [shape: bf16[508,256], index: 1, kind: input, shape index: {}]   ;;  %s1834_s2 = inlined_call_operand.hbm [shape: f32[1,256], index: 2, kind: input, shape index: {}]   ;;  %s1835_s3 = inlined_call_operand.hbm [shape: bf16[256,128], index: 3, kind: input, shape index: {}]   ;;  %s1836_s4 = inlined_call_operand.vmem [shape: f32[1,128], index: 4, kind: input, shape index: {}]   ;;  %s1837_s5 = inlined_call_operand.hbm [shape: bf16[128,128], index: 5, kind: input, shape index: {}]   ;;  %s1838_s6 = inlined_call_operand.vmem [shape: f32[1,128], index: 6, kind: input, shape index: {}]   ;;  %s1839_s7 = inlined_call_operand.hbm [shape: bf16[128,128], index: 7, kind: input, shape index: {}]   ;;  %s1840_s8 = inlined_call_operand.vmem [shape: f32[1,128], index: 8, kind: input, shape index: {}]   ;;  %s1841_s9 = inlined_call_operand.hbm [shape: bf16[8,128], index: 9, kind: output, shape index: {}]  }
   0x1   :  { %15 = vsyncpa [#allocation6], 0 }
   0x2   :  { %16 = vsyncpa [#allocation9], 0 }
   0x3   :  { %17 = vsyncpa [#allocation12], 0 }
   0x4   :  { %18 = vsyncpa [#allocation4], 0  ;;  %s36_s11 = sshll.u32 %s1833_s1, 4  ;;  %s37_s11 = int_to_ptr.hbm [resolvable:$true] %s36_s11 }
   0x5   :  { %22 = vsyncadd [#allocation3], 512  ;;  %s1707_s12 = smov [#allocation5]   ;;  %s60_s16 = sshll.u32 %s1835_s3, 4  ;;  %s61_s16 = int_to_ptr.hbm [resolvable:$true] %s60_s16 }
   0x6   :  { %s38_s13 = sshll.u32 %s1707_s12, 4  ;;  %s1708_s17 = smov 128   ;;  %s39_s13 = int_to_ptr.vmem [resolvable:$true] %s38_s13 }
   0x7   :  { %s1709_s18 = smov 8   ;;  %s1710_s19 = smov [#allocation8]  }
   0x8   :  { %44 = dma.hbm_to_vmem [thread:$0]  %s37_s11, 8192, %s39_s13, [#allocation6], %s1708_s17, %s1708_s17, %s1709_s18  }
   0x9   :  { %s62_s20 = sshll.u32 %s1710_s19, 4  ;;  %s1711_s21 = smov 64   ;;  %s63_s20 = int_to_ptr.vmem [resolvable:$true] %s62_s20 }
   0xa   :  { %s1712_s22 = smov 4   ;;  %s23_s24 = sshll.u32 %s1832_s0, 4  ;;  %s24_s24 = int_to_ptr.hbm [resolvable:$true] %s23_s24 }
   0xb   :  { %68 = dma.hbm_to_vmem [thread:$0]  %s61_s16, 2048, %s63_s20, [#allocation9], %s1711_s21, %s1711_s21, %s1712_s22  }
   0xc   :  { %s1713_s25 = smov [#allocation2]   ;;  %s50_s28 = sshll.u32 %s1834_s2, 4  ;;  %s51_s28 = int_to_ptr.hbm [resolvable:$true] %s50_s28 }
   0xd   :  { %s25_s3 = sshll.u32 %s1713_s25, 4  ;;  %s1714_s29 = smov 512   ;;  %s26_s3 = int_to_ptr.vmem [resolvable:$true] %s25_s3 }
   0xe   :  { %s1715_s30 = smov 32   ;;  %s1716_s10 = smov [#allocation7]  }
   0xf   :  { %31 = dma.hbm_to_vmem [thread:$0]  %s24_s24, 512, %s26_s3, [#allocation3], %s1714_s29, %s1714_s29, %s1715_s30  }
  0x10   :  { %s52_s11 = sshll.u32 %s1716_s10, 4  ;;  %s75_s14 = sshll.u32 %s1837_s5, 4  ;;  %s53_s11 = int_to_ptr.vmem [resolvable:$true] %s52_s11  ;;  %s76_s14 = int_to_ptr.hbm [resolvable:$true] %s75_s14 }
  0x11   :  { %55 = dma.hbm_to_vmem [thread:$0]  %s51_s28, 32, %s53_s11, [#allocation6]  }
  0x12   :  { %s90_s16 = sshll.u32 %s1839_s7, 4  ;;  %s1717_s17 = smov [#allocation10]   ;;  %s91_s16 = int_to_ptr.hbm [resolvable:$true] %s90_s16 }
  0x13   :  { %s77_s18 = sshll.u32 %s1717_s17, 4  ;;  %s1718_s2 = smov [#allocation11]   ;;  %s78_s18 = int_to_ptr.vmem [resolvable:$true] %s77_s18 }
  0x14   :  { %83 = dma.hbm_to_vmem [thread:$0]  %s76_s14, 1024, %s78_s18, [#allocation9], %s1711_s21, %s1711_s21, %s1712_s22  }
  0x15   :  { %s92_s19 = sshll.u32 %s1718_s2, 4  ;;  %s93_s19 = int_to_ptr.vmem [resolvable:$true] %s92_s19 }
  0x16   :  { %98 = dma.hbm_to_vmem [thread:$0]  %s91_s16, 1024, %s93_s19, [#allocation12], %s1711_s21, %s1711_s21, %s1712_s22  }
  0x17   :  { %1697 = dma.done.wait [#allocation3], 1024  }
  0x18   :  { %1698 = vsyncadd [#allocation3], 4294966272 }
  0x19   :  { %1699 = dma.done.wait [#allocation6], 8224  }
  0x1a   :  { %1700 = vsyncadd [#allocation6], 4294959072 }
  0x1b   :  { %1701 = dma.done.wait [#allocation9], 3072  }
  0x1c   :  { %1702 = vsyncadd [#allocation9], 4294964224 }
  0x1d   :  { %1703 = dma.done.wait [#allocation12], 1024  }
  0x1e   :  { %1704 = vsyncadd [#allocation12], 4294966272  ;;  %vm529_vm0 = vcmask 1045504   ;;  %v1068_v0 = vld [vmem:[#allocation5 + $0x70] sm:$0xf]  ;;  %vm525_vm1 = vcmask 1014784  }
  0x1f   :  { %v1411_v1 = vld [vmem:[#allocation5 + $0x74] sm:$0xf0]  ;;  %v1132_v2 = vld [vmem:[#allocation5 + $0xf0] sm:$0xf]  ;;  %v1060_v11 = vld [vmem:[#allocation5 + $0x60] sm:$0xf] }
  0x20   :  { %v1069_v3 = vor.u32 %v1411_v1, %v1068_v0  ;;  %v1427_v4 = vld [vmem:[#allocation5 + $0xf4] sm:$0xf0]  ;;  %v1196_v5 = vld [vmem:[#allocation5 + $0x170] sm:$0xf]  ;;  %v1409_v13 = vld [vmem:[#allocation5 + $0x64] sm:$0xf0] }
  0x21   :  { %v1443_v6 = vld [vmem:[#allocation5 + $0x174] sm:$0xf0]  ;;  %v1133_v7 = vor.u32 %v1427_v4, %v1132_v2  ;;  %v1260_v9 = vld [vmem:[#allocation5 + $0x1f0] sm:$0xf]  ;;  %v1124_v14 = vld [vmem:[#allocation5 + $0xe0] sm:$0xf]  ;;  %v1061_v16 = vor.u32 %v1409_v13, %v1060_v11 }
  0x22   :  { %v1197_v8 = vor.u32 %v1443_v6, %v1196_v5  ;;  %v1459_v10 = vld [vmem:[#allocation5 + $0x1f4] sm:$0x30]  ;;  %536 = vmatpush.bf16.msra.mxu0 %v1069_v3  ;;  %v1425_v15 = vld [vmem:[#allocation5 + $0xe4] sm:$0xf0]  ;;  %v1188_v18 = vld [vmem:[#allocation5 + $0x160] sm:$0xf] }
  0x23   :  { %v1261_v12 = vor.u32 %v1459_v10, %v1260_v9  ;;  %550 = vmatpush.bf16.msra.mxu1 %v1133_v7  ;;  %v1125_v17 = vor.u32 %v1425_v15, %v1124_v14  ;;  %v1441_v19 = vld [vmem:[#allocation5 + $0x164] sm:$0xf0]  ;;  %v1252_v20 = vld [vmem:[#allocation5 + $0x1e0] sm:$0xf]  ;;  %v1052_v24 = vld [vmem:[#allocation5 + $0x50] sm:$0xf] }
  0x24   :  { %564 = vmatpush.bf16.msra.mxu2 %v1197_v8  ;;  %v1189_v22 = vor.u32 %v1441_v19, %v1188_v18  ;;  %v1457_v23 = vld [vmem:[#allocation5 + $0x1e4] sm:$0xf0]  ;;  %v1407_v26 = vld [vmem:[#allocation5 + $0x54] sm:$0xf0]  ;;  %v1116_v27 = vld [vmem:[#allocation5 + $0xd0] sm:$0xf] }
  0x25   :  { %v531_v21 = vsel %vm529_vm0, %v1261_v12, 0  ;;  %v1253_v25 = vor.u32 %v1457_v23, %v1252_v20  ;;  %v1423_v28 = vld [vmem:[#allocation5 + $0xd4] sm:$0xf0]  ;;  %v1053_v29 = vor.u32 %v1407_v26, %v1052_v24  ;;  %v1180_v30 = vld [vmem:[#allocation5 + $0x150] sm:$0xf] }
  0x26   :  { %578 = vmatpush.bf16.msra.mxu3 %v531_v21  ;;  %537 = vmatpush.bf16.msra.mxu0 %v1061_v16  ;;  %v1439_v31 = vld [vmem:[#allocation5 + $0x154] sm:$0xf0]  ;;  %v1244_v32 = vld [vmem:[#allocation5 + $0x1d0] sm:$0xf]  ;;  %v1117_v33 = vor.u32 %v1423_v28, %v1116_v27  ;;  %v1044_v36 = vld [vmem:[#allocation5 + $0x40] sm:$0xf] }
  0x27   :  { %551 = vmatpush.bf16.msra.mxu1 %v1125_v17  ;;  %v1181_v34 = vor.u32 %v1439_v31, %v1180_v30  ;;  %v1455_v35 = vld [vmem:[#allocation5 + $0x1d4] sm:$0xf0]  ;;  %v1405_v37 = vld [vmem:[#allocation5 + $0x44] sm:$0xf0]  ;;  %v1108_v38 = vld [vmem:[#allocation5 + $0xc0] sm:$0xf] }
  0x28   :  { %565 = vmatpush.bf16.msra.mxu2 %v1189_v22  ;;  %v1421_v39 = vld [vmem:[#allocation5 + $0xc4] sm:$0xf0]  ;;  %v1172_v40 = vld [vmem:[#allocation5 + $0x140] sm:$0xf]  ;;  %v1245_v41 = vor.u32 %v1455_v35, %v1244_v32  ;;  %v1045_v43 = vor.u32 %v1405_v37, %v1044_v36  ;;  %v1036_v48 = vld [vmem:[#allocation5 + $0x30] sm:$0xf] }
  0x29   :  { %v1437_v42 = vld [vmem:[#allocation5 + $0x144] sm:$0xf0]  ;;  %v1236_v44 = vld [vmem:[#allocation5 + $0x1c0] sm:$0xf]  ;;  %v1109_v46 = vor.u32 %v1421_v39, %v1108_v38  ;;  %v1403_v49 = vld [vmem:[#allocation5 + $0x34] sm:$0xf0] }
  0x2a   :  { %579 = vmatpush.bf16.msra.mxu3 %v1253_v25  ;;  %538 = vmatpush.bf16.msra.mxu0 %v1053_v29  ;;  %v1453_v45 = vld [vmem:[#allocation5 + $0x1c4] sm:$0xf0]  ;;  %v1173_v47 = vor.u32 %v1437_v42, %v1172_v40  ;;  %v1100_v50 = vld [vmem:[#allocation5 + $0xb0] sm:$0xf]  ;;  %v1419_v51 = vld [vmem:[#allocation5 + $0xb4] sm:$0xf0]  ;;  %v1037_v55 = vor.u32 %v1403_v49, %v1036_v48 }
  0x2b   :  { %552 = vmatpush.bf16.msra.mxu1 %v1117_v33  ;;  %v1164_v52 = vld [vmem:[#allocation5 + $0x130] sm:$0xf]  ;;  %v1435_v53 = vld [vmem:[#allocation5 + $0x134] sm:$0xf0]  ;;  %v1237_v54 = vor.u32 %v1453_v45, %v1236_v44  ;;  %v1101_v58 = vor.u32 %v1419_v51, %v1100_v50  ;;  %v1028_v60 = vld [vmem:[#allocation5 + $0x20] sm:$0xf] }
  0x2c   :  { %566 = vmatpush.bf16.msra.mxu2 %v1181_v34  ;;  %v1228_v56 = vld [vmem:[#allocation5 + $0x1b0] sm:$0xf]  ;;  %v1451_v57 = vld [vmem:[#allocation5 + $0x1b4] sm:$0xf0]  ;;  %v1165_v59 = vor.u32 %v1435_v53, %v1164_v52  ;;  %v1401_v61 = vld [vmem:[#allocation5 + $0x24] sm:$0xf0] }
  0x2d   :  { %v1092_v62 = vld [vmem:[#allocation5 + $0xa0] sm:$0xf]  ;;  %v1417_v63 = vld [vmem:[#allocation5 + $0xa4] sm:$0xf0]  ;;  %v1229_v2 = vor.u32 %v1451_v57, %v1228_v56  ;;  %v1029_v3 = vor.u32 %v1401_v61, %v1028_v60  ;;  %v1020_v8 = vld [vmem:[#allocation5 + $0x10] sm:$0xf] }
  0x2e   :  { %580 = vmatpush.bf16.msra.mxu3 %v1245_v41  ;;  %539 = vmatpush.bf16.msra.mxu0 %v1045_v43  ;;  %v1156_v0 = vld [vmem:[#allocation5 + $0x120] sm:$0xf]  ;;  %v1433_v1 = vld [vmem:[#allocation5 + $0x124] sm:$0xf0]  ;;  %v1093_v6 = vor.u32 %v1417_v63, %v1092_v62  ;;  %v1399_v9 = vld [vmem:[#allocation5 + $0x14] sm:$0xf0] }
  0x2f   :  { %553 = vmatpush.bf16.msra.mxu1 %v1109_v46  ;;  %v1220_v4 = vld [vmem:[#allocation5 + $0x1a0] sm:$0xf]  ;;  %v1449_v5 = vld [vmem:[#allocation5 + $0x1a4] sm:$0xf0]  ;;  %v1157_v7 = vor.u32 %v1433_v1, %v1156_v0  ;;  %v1084_v10 = vld [vmem:[#allocation5 + $0x90] sm:$0xf]  ;;  %v1021_v17 = vor.u32 %v1399_v9, %v1020_v8 }
  0x30   :  { %567 = vmatpush.bf16.msra.mxu2 %v1173_v47  ;;  %v1415_v11 = vld [vmem:[#allocation5 + $0x94] sm:$0xf0]  ;;  %v1148_v12 = vld [vmem:[#allocation5 + $0x110] sm:$0xf]  ;;  %v1221_v14 = vor.u32 %v1449_v5, %v1220_v4  ;;  %v1012_v18 = vld [vmem:[#allocation5] sm:$0xf] }
  0x31   :  { %v1431_v13 = vld [vmem:[#allocation5 + $0x114] sm:$0xf0]  ;;  %v1212_v15 = vld [vmem:[#allocation5 + $0x190] sm:$0xf]  ;;  %v1397_v19 = vld [vmem:[#allocation5 + $0x4] sm:$0xf0]  ;;  %v1085_v21 = vor.u32 %v1415_v11, %v1084_v10 }
  0x32   :  { %581 = vmatpush.bf16.msra.mxu3 %v1237_v54  ;;  %540 = vmatpush.bf16.msra.mxu0 %v1037_v55  ;;  %v1447_v16 = vld [vmem:[#allocation5 + $0x194] sm:$0xf0]  ;;  %v1076_v20 = vld [vmem:[#allocation5 + $0x80] sm:$0xf]  ;;  %v1149_v22 = vor.u32 %v1431_v13, %v1148_v12  ;;  %v1413_v23 = vld [vmem:[#allocation5 + $0x84] sm:$0xf0]  ;;  %v1013_v36 = vor.u32 %v1397_v19, %v1012_v18 }
  0x33   :  { %554 = vmatpush.bf16.msra.mxu1 %v1101_v58  ;;  %v1140_v24 = vld [vmem:[#allocation5 + $0x100] sm:$0xf]  ;;  %v1429_v25 = vld [vmem:[#allocation5 + $0x104] sm:$0xf0]  ;;  %v1410_v28 = vld [vmem:[#allocation5 + $0x74] sm:$0xf]  ;;  %v1213_v31 = vor.u32 %v1447_v16, %v1212_v15  ;;  %v1077_v40 = vor.u32 %v1413_v23, %v1076_v20 }
  0x34   :  { %568 = vmatpush.bf16.msra.mxu2 %v1165_v59  ;;  %v1204_v26 = vld [vmem:[#allocation5 + $0x180] sm:$0xf]  ;;  %v1445_v27 = vld [vmem:[#allocation5 + $0x184] sm:$0xf0]  ;;  %v1458_v29 = vld [vmem:[#allocation5 + $0x1f4] sm:$0xf]  ;;  %v1141_v41 = vor.u32 %v1429_v25, %v1140_v24 }
  0x35   :  { %v1262_v30 = vld [vmem:[#allocation5 + $0x1f8] sm:$0x30]  ;;  %v1426_v33 = vld [vmem:[#allocation5 + $0xf4] sm:$0xf]  ;;  %v125_v43 = vld [vmem:[#allocation2] sm:$0xff]  ;;  %v1205_v51 = vor.u32 %v1445_v27, %v1204_v26 }
  0x36   :  { %582 = vmatpush.bf16.msra.mxu3 %v1229_v2  ;;  %541 = vmatpush.bf16.msra.mxu0 %v1029_v3  ;;  %v1070_v32 = vld [vmem:[#allocation5 + $0x78] sm:$0xf0]  ;;  %v127_v35 = vld [vmem:[#allocation2 + $0x10] sm:$0xff]  ;;  %v1265_v42 = vor.u32 %v1458_v29, %v1262_v30  ;;  %v129_v44 = vld [vmem:[#allocation2 + $0x20] sm:$0xff] }
  0x37   :  { %555 = vmatpush.bf16.msra.mxu1 %v1093_v6  ;;  %v1134_v34 = vld [vmem:[#allocation5 + $0xf8] sm:$0xf0]  ;;  %v1442_v37 = vld [vmem:[#allocation5 + $0x174] sm:$0xf]  ;;  %v1073_v46 = vor.u32 %v1410_v28, %v1070_v32  ;;  %v126_v49 = vld [vmem:[#allocation2 + $0x8] sm:$0xff]  ;;  %v1801_v61 = vpack.c.bf16 %v129_v44, %v125_v43 }
  0x38   :  { %569 = vmatpush.bf16.msra.mxu2 %v1157_v7  ;;  %v1198_v38 = vld [vmem:[#allocation5 + $0x178] sm:$0xf0]  ;;  %v131_v39 = vld [vmem:[#allocation2 + $0x30] sm:$0xff]  ;;  %v1137_v47 = vor.u32 %v1426_v33, %v1134_v34  ;;  %v130_v50 = vld [vmem:[#allocation2 + $0x28] sm:$0xff]  ;;  %v534_v60 = vsel %vm529_vm0, %v1265_v42, 0 }
  0x39   :  { %v128_v45 = vld [vmem:[#allocation2 + $0x18] sm:$0xff]  ;;  %v1201_v52 = vor.u32 %v1442_v37, %v1198_v38  ;;  %v1408_v53 = vld [vmem:[#allocation5 + $0x64] sm:$0xf]  ;;  %v1062_v54 = vld [vmem:[#allocation5 + $0x68] sm:$0xf0]  ;;  %v1798_v56 = vpack.c.bf16 %v131_v39, %v127_v35  ;;  %v1803_v0 = vpack.c.bf16 %v130_v50, %v126_v49 }
  0x3a   :  { %583 = vmatpush.bf16.msra.mxu3 %v1221_v14  ;;  %542 = vmatpush.bf16.msra.mxu0 %v1021_v17  ;;  %v132_v48 = vld [vmem:[#allocation2 + $0x38] sm:$0xff]  ;;  %v1424_v55 = vld [vmem:[#allocation5 + $0xe4] sm:$0xf]  ;;  %v1126_v57 = vld [vmem:[#allocation5 + $0xe8] sm:$0xf0]  ;;  %v1065_v2 = vor.u32 %v1408_v53, %v1062_v54 }
  0x3b   :  { %556 = vmatpush.bf16.msra.mxu1 %v1085_v21  ;;  %v1440_v58 = vld [vmem:[#allocation5 + $0x164] sm:$0xf]  ;;  %v1190_v59 = vld [vmem:[#allocation5 + $0x168] sm:$0xf0]  ;;  %v1805_v1 = vpack.c.bf16 %v132_v48, %v128_v45  ;;  %v1129_v3 = vor.u32 %v1424_v55, %v1126_v57  ;;  %v1406_v5 = vld [vmem:[#allocation5 + $0x54] sm:$0xf] }
  0x3c   :  { %570 = vmatpush.bf16.msra.mxu2 %v1149_v22  ;;  %v1456_v62 = vld [vmem:[#allocation5 + $0x1e4] sm:$0xf]  ;;  %v1254_v63 = vld [vmem:[#allocation5 + $0x1e8] sm:$0xf0]  ;;  %v1193_v4 = vor.u32 %v1440_v58, %v1190_v59  ;;  %v1054_v6 = vld [vmem:[#allocation5 + $0x58] sm:$0xf0] }
  0x3d   :  { %v1422_v7 = vld [vmem:[#allocation5 + $0xd4] sm:$0xf]  ;;  %v1257_v8 = vor.u32 %v1456_v62, %v1254_v63  ;;  %v1118_v9 = vld [vmem:[#allocation5 + $0xd8] sm:$0xf0]  ;;  %v1057_v14 = vor.u32 %v1406_v5, %v1054_v6  ;;  %v1404_v17 = vld [vmem:[#allocation5 + $0x44] sm:$0xf] }
  0x3e   :  { %584 = vmatpush.bf16.msra.mxu3 %v1213_v31  ;;  %543 = vmatpush.bf16.msra.mxu0 %v1013_v36  ;;  %v1438_v10 = vld [vmem:[#allocation5 + $0x154] sm:$0xf]  ;;  %v1182_v11 = vld [vmem:[#allocation5 + $0x158] sm:$0xf0]  ;;  %v1121_v15 = vor.u32 %v1422_v7, %v1118_v9  ;;  %v1046_v18 = vld [vmem:[#allocation5 + $0x48] sm:$0xf0] }
  0x3f   :  { %557 = vmatpush.bf16.msra.mxu1 %v1077_v40  ;;  %v1454_v12 = vld [vmem:[#allocation5 + $0x1d4] sm:$0xf]  ;;  %v1246_v13 = vld [vmem:[#allocation5 + $0x1d8] sm:$0xf0]  ;;  %v1185_v16 = vor.u32 %v1438_v10, %v1182_v11  ;;  %v1420_v19 = vld [vmem:[#allocation5 + $0xc4] sm:$0xf]  ;;  %v1049_v26 = vor.u32 %v1404_v17, %v1046_v18 }
  0x40   :  { %571 = vmatpush.bf16.msra.mxu2 %v1141_v41  ;;  %v1249_v20 = vor.u32 %v1454_v12, %v1246_v13  ;;  %v1110_v21 = vld [vmem:[#allocation5 + $0xc8] sm:$0xf0]  ;;  %v1436_v22 = vld [vmem:[#allocation5 + $0x144] sm:$0xf]  ;;  %v1402_v29 = vld [vmem:[#allocation5 + $0x34] sm:$0xf] }
  0x41   :  { %544 = vmatmul.bf16.vlgmr.msra.gmra.mxu0 %v1801_v61  ;;  %v1174_v23 = vld [vmem:[#allocation5 + $0x148] sm:$0xf0]  ;;  %v1452_v24 = vld [vmem:[#allocation5 + $0x1c4] sm:$0xf]  ;;  %v1113_v27 = vor.u32 %v1420_v19, %v1110_v21  ;;  %v1038_v30 = vld [vmem:[#allocation5 + $0x38] sm:$0xf0] }
  0x42   :  { %592 = vmatpush.bf16.msrb.mxu0 %v1073_v46  ;;  %585 = vmatpush.bf16.msra.mxu3 %v1205_v51  ;;  %v1238_v25 = vld [vmem:[#allocation5 + $0x1c8] sm:$0xf0]  ;;  %v1177_v28 = vor.u32 %v1436_v22, %v1174_v23  ;;  %v1418_v31 = vld [vmem:[#allocation5 + $0xb4] sm:$0xf]  ;;  %v1102_v33 = vld [vmem:[#allocation5 + $0xb8] sm:$0xf0]  ;;  %v1041_v38 = vor.u32 %v1402_v29, %v1038_v30 }
  0x43   :  { %606 = vmatpush.bf16.msrb.mxu1 %v1137_v47  ;;  %572 = vmatmul.bf16.vlgmr.msra.gmra.mxu2 %v1798_v56  ;;  %v1241_v32 = vor.u32 %v1452_v24, %v1238_v25  ;;  %v1434_v34 = vld [vmem:[#allocation5 + $0x134] sm:$0xf]  ;;  %v1166_v35 = vld [vmem:[#allocation5 + $0x138] sm:$0xf0]  ;;  %v1400_v39 = vld [vmem:[#allocation5 + $0x24] sm:$0xf]  ;;  %v1105_v42 = vor.u32 %v1418_v31, %v1102_v33 }
  0x44   :  { %620 = vmatpush.bf16.msrb.mxu2 %v1201_v52  ;;  %558 = vmatmul.bf16.vlgmr.msra.gmra.mxu1 %v1803_v0  ;;  %v1450_v36 = vld [vmem:[#allocation5 + $0x1b4] sm:$0xf]  ;;  %v1230_v37 = vld [vmem:[#allocation5 + $0x1b8] sm:$0xf0]  ;;  %v1030_v40 = vld [vmem:[#allocation5 + $0x28] sm:$0xf0]  ;;  %v1169_v43 = vor.u32 %v1434_v34, %v1166_v35 }
  0x45   :  { %1266 = vmatmul.msk.bf16.vlgmr.msra.gmra.mxu3 %vm525_vm1, %v1805_v1  ;;  %v1416_v41 = vld [vmem:[#allocation5 + $0xa4] sm:$0xf]  ;;  %v1094_v44 = vld [vmem:[#allocation5 + $0xa8] sm:$0xf0]  ;;  %v1233_v45 = vor.u32 %v1450_v36, %v1230_v37  ;;  %v1033_v50 = vor.u32 %v1400_v39, %v1030_v40  ;;  %v1398_v53 = vld [vmem:[#allocation5 + $0x14] sm:$0xf] }
  0x46   :  { %634 = vmatpush.bf16.msrb.mxu3 %v534_v60  ;;  %593 = vmatpush.bf16.msrb.mxu0 %v1065_v2  ;;  %v1432_v46 = vld [vmem:[#allocation5 + $0x124] sm:$0xf]  ;;  %v1158_v47 = vld [vmem:[#allocation5 + $0x128] sm:$0xf0]  ;;  %v1097_v51 = vor.u32 %v1416_v41, %v1094_v44  ;;  %v1022_v54 = vld [vmem:[#allocation5 + $0x18] sm:$0xf0] }
  0x47   :  { %607 = vmatpush.bf16.msrb.mxu1 %v1129_v3  ;;  %v1448_v48 = vld [vmem:[#allocation5 + $0x1a4] sm:$0xf]  ;;  %v1222_v49 = vld [vmem:[#allocation5 + $0x1a8] sm:$0xf0]  ;;  %v1161_v52 = vor.u32 %v1432_v46, %v1158_v47  ;;  %v1414_v55 = vld [vmem:[#allocation5 + $0x94] sm:$0xf]  ;;  %v1025_v2 = vor.u32 %v1398_v53, %v1022_v54 }
  0x48   :  { %621 = vmatpush.bf16.msrb.mxu2 %v1193_v4  ;;  %v1225_v57 = vor.u32 %v1448_v48, %v1222_v49  ;;  %v1086_v58 = vld [vmem:[#allocation5 + $0x98] sm:$0xf0]  ;;  %v1430_v59 = vld [vmem:[#allocation5 + $0x114] sm:$0xf]  ;;  %v1396_v5 = vld [vmem:[#allocation5 + $0x4] sm:$0xf] }
  0x49   :  { %v1150_v60 = vld [vmem:[#allocation5 + $0x118] sm:$0xf0]  ;;  %v1446_v62 = vld [vmem:[#allocation5 + $0x194] sm:$0xf]  ;;  %v1089_v3 = vor.u32 %v1414_v55, %v1086_v58  ;;  %v1014_v6 = vld [vmem:[#allocation5 + $0x8] sm:$0xf0] }
  0x4a   :  { %635 = vmatpush.bf16.msrb.mxu3 %v1257_v8  ;;  %594 = vmatpush.bf16.msrb.mxu0 %v1057_v14  ;;  %v1214_v63 = vld [vmem:[#allocation5 + $0x198] sm:$0xf0]  ;;  %v1153_v4 = vor.u32 %v1430_v59, %v1150_v60  ;;  %v1412_v7 = vld [vmem:[#allocation5 + $0x84] sm:$0xf]  ;;  %v1078_v9 = vld [vmem:[#allocation5 + $0x88] sm:$0xf0]  ;;  %v1017_v14 = vor.u32 %v1396_v5, %v1014_v6 }
  0x4b   :  { %608 = vmatpush.bf16.msrb.mxu1 %v1121_v15  ;;  %v1217_v8 = vor.u32 %v1446_v62, %v1214_v63  ;;  %v1428_v10 = vld [vmem:[#allocation5 + $0x104] sm:$0xf]  ;;  %v1142_v11 = vld [vmem:[#allocation5 + $0x108] sm:$0xf0]  ;;  %v1081_v15 = vor.u32 %v1412_v7, %v1078_v9  ;;  %v1467_v18 = vld [vmem:[#allocation8 + $0x38] sm:$0xff] }
  0x4c   :  { %622 = vmatpush.bf16.msrb.mxu2 %v1185_v16  ;;  %v1444_v12 = vld [vmem:[#allocation5 + $0x184] sm:$0xf]  ;;  %v1206_v13 = vld [vmem:[#allocation5 + $0x188] sm:$0xf0]  ;;  %v1145_v16 = vor.u32 %v1428_v10, %v1142_v11  ;;  %v1466_v19 = vld [vmem:[#allocation8 + $0x30] sm:$0xff] }
  0x4d   :  { %v1209_v17 = vor.u32 %v1444_v12, %v1206_v13  ;;  %v1464_v21 = vld [vmem:[#allocation8 + $0x20] sm:$0xff]  ;;  %v1463_v22 = vld [vmem:[#allocation8 + $0x18] sm:$0xff]  ;;  %v1462_v23 = vld [vmem:[#allocation8 + $0x10] sm:$0xff] }
  0x4e   :  { %636 = vmatpush.bf16.msrb.mxu3 %v1249_v20  ;;  %595 = vmatpush.bf16.msrb.mxu0 %v1049_v26  ;;  %v1465_v20 = vld [vmem:[#allocation8 + $0x28] sm:$0xff]  ;;  %v1475_v25 = vld [vmem:[#allocation8 + $0x78] sm:$0xff]  ;;  %v1472_v31 = vld [vmem:[#allocation8 + $0x60] sm:$0xff] }
  0x4f   :  { %609 = vmatpush.bf16.msrb.mxu1 %v1113_v27  ;;  %v1461_v24 = vld [vmem:[#allocation8 + $0x8] sm:$0xff]  ;;  %v1471_v37 = vld [vmem:[#allocation8 + $0x58] sm:$0xff]  ;;  %v1470_v41 = vld [vmem:[#allocation8 + $0x50] sm:$0xff] }
  0x50   :  { %623 = vmatpush.bf16.msrb.mxu2 %v1177_v28  ;;  %v1469_v46 = vld [vmem:[#allocation8 + $0x48] sm:$0xff]  ;;  %v1468_v47 = vld [vmem:[#allocation8 + $0x40] sm:$0xff]  ;;  %v1483_v11 = vld [vmem:[#allocation10 + $0x38] sm:$0xff] }
  0x51   :  { %v1482_v12 = vld [vmem:[#allocation10 + $0x30] sm:$0xff]  ;;  %v1481_v13 = vld [vmem:[#allocation10 + $0x28] sm:$0xff] }
  0x52   :  { %637 = vmatpush.bf16.msrb.mxu3 %v1241_v32  ;;  %596 = vmatpush.bf16.msrb.mxu0 %v1041_v38 }
  0x53   :  { %610 = vmatpush.bf16.msrb.mxu1 %v1105_v42 }
  0x54   :  { %624 = vmatpush.bf16.msrb.mxu2 %v1169_v43 }
  0x56   :  { %638 = vmatpush.bf16.msrb.mxu3 %v1233_v45  ;;  %597 = vmatpush.bf16.msrb.mxu0 %v1033_v50 }
  0x57   :  { %611 = vmatpush.bf16.msrb.mxu1 %v1097_v51 }
  0x58   :  { %625 = vmatpush.bf16.msrb.mxu2 %v1161_v52 }
  0x5a   :  { %639 = vmatpush.bf16.msrb.mxu3 %v1225_v57  ;;  %598 = vmatpush.bf16.msrb.mxu0 %v1025_v2 }
  0x5b   :  { %612 = vmatpush.bf16.msrb.mxu1 %v1089_v3 }
  0x5c   :  { %626 = vmatpush.bf16.msrb.mxu2 %v1153_v4 }
  0x5e   :  { %640 = vmatpush.bf16.msrb.mxu3 %v1217_v8  ;;  %599 = vmatpush.bf16.msrb.mxu0 %v1017_v14  ;;  %v1480_v14 = vld [vmem:[#allocation10 + $0x20] sm:$0xff] }
  0x5f   :  { %613 = vmatpush.bf16.msrb.mxu1 %v1081_v15  ;;  %v1479_v15 = vld [vmem:[#allocation10 + $0x18] sm:$0xff] }
  0x60   :  { %627 = vmatpush.bf16.msrb.mxu2 %v1145_v16  ;;  %v1478_v16 = vld [vmem:[#allocation10 + $0x10] sm:$0xff] }
  0x61   :  { %600 = vmatmul.bf16.vlgmr.msrb.gmra.mxu0 %v1801_v61  ;;  %v1460_v61 = vld [vmem:[#allocation8] sm:$0xff] }
  0x62   :  { %641 = vmatpush.bf16.msrb.mxu3 %v1209_v17  ;;  %786 = vmatpush.bf16.msra.mxu0 %v1467_v18  ;;  %v1477_v17 = vld [vmem:[#allocation10 + $0x8] sm:$0xff]  ;;  %v1476_v18 = vld [vmem:[#allocation10] sm:$0xff] }
  0x63   :  { %614 = vmatmul.bf16.vlgmr.msrb.gmra.mxu1 %v1803_v0  ;;  %628 = vmatmul.bf16.vlgmr.msrb.gmra.mxu2 %v1798_v56  ;;  %v201_v0 = vld [vmem:[#allocation7] sm:$0x3]  ;;  %v1474_v56 = vld [vmem:[#allocation8 + $0x70] sm:$0xff] }
  0x64   :  { %800 = vmatpush.bf16.msra.mxu1 %v1475_v25  ;;  %v203_v26 = vperm.slane %v201_v0, 0  ;;  %v204_v51 = vperm.slane %v201_v0, 1  ;;  %885 = vmatpush.bf16.msra.mxu2 %v1483_v11 }
  0x65   :  { %1267 = vmatmul.msk.bf16.vlgmr.msrb.gmra.mxu3 %vm525_vm1, %v1805_v1  ;;  %v1473_v1 = vld [vmem:[#allocation8 + $0x68] sm:$0xff] }
  0x66   :  { %787 = vmatpush.bf16.msra.mxu0 %v1466_v19  ;;  %v1491_v19 = vld [vmem:[#allocation11 + $0x38] sm:$0xff] }
  0x67   :  { %970 = vmatpush.bf16.msra.mxu3 %v1491_v19 }
  0x68   :  { %801 = vmatpush.bf16.msra.mxu1 %v1474_v56  ;;  %886 = vmatpush.bf16.msra.mxu2 %v1482_v12 }
  0x6a   :  { %788 = vmatpush.bf16.msra.mxu0 %v1465_v20  ;;  %v1490_v20 = vld [vmem:[#allocation11 + $0x30] sm:$0xff] }
  0x6b   :  { %971 = vmatpush.bf16.msra.mxu3 %v1490_v20 }
  0x6c   :  { %802 = vmatpush.bf16.msra.mxu1 %v1473_v1  ;;  %887 = vmatpush.bf16.msra.mxu2 %v1481_v13 }
  0x6e   :  { %789 = vmatpush.bf16.msra.mxu0 %v1464_v21 }
  0x70   :  { %803 = vmatpush.bf16.msra.mxu1 %v1472_v31  ;;  %888 = vmatpush.bf16.msra.mxu2 %v1480_v14  ;;  %v1487_v31 = vld [vmem:[#allocation11 + $0x18] sm:$0xff] }
  0x72   :  { %790 = vmatpush.bf16.msra.mxu0 %v1463_v22  ;;  %v1489_v22 = vld [vmem:[#allocation11 + $0x28] sm:$0xff] }
  0x73   :  { %972 = vmatpush.bf16.msra.mxu3 %v1489_v22 }
  0x74   :  { %804 = vmatpush.bf16.msra.mxu1 %v1471_v37  ;;  %889 = vmatpush.bf16.msra.mxu2 %v1479_v15 }
  0x76   :  { %791 = vmatpush.bf16.msra.mxu0 %v1462_v23  ;;  %v1510_v23 = vld [vmem:[%s1836_s4] ss:$0 sm:$0xff] }
  0x78   :  { %805 = vmatpush.bf16.msra.mxu1 %v1470_v41  ;;  %890 = vmatpush.bf16.msra.mxu2 %v1478_v16 }
  0x7a   :  { %792 = vmatpush.bf16.msra.mxu0 %v1461_v24 }
  0x7c   :  { %806 = vmatpush.bf16.msra.mxu1 %v1469_v46  ;;  %891 = vmatpush.bf16.msra.mxu2 %v1477_v17 }
  0x7e   :  { %793 = vmatpush.bf16.msra.mxu0 %v1460_v61 }
  0x80   :  { %807 = vmatpush.bf16.msra.mxu1 %v1468_v47  ;;  %892 = vmatpush.bf16.msra.mxu2 %v1476_v18 }
  0xbe   :  { %v545_v27 = vpop.f32.mrf.mxu0 }
  0xbf   :  { %v546_v29 = vadd.f32 %v545_v27, %v203_v26 }
  0xc1   :  { %v559_v28 = vpop.f32.mrf.mxu1 }
  0xc2   :  { %v560_v30 = vadd.f32 %v559_v28, %v546_v29 }
  0xc6   :  { %v573_v32 = vpop.f32.mrf.mxu2  ;;  %v547_v35 = vpop.f32.mrf.mxu0 }
  0xc7   :  { %v574_v34 = vadd.f32 %v573_v32, %v560_v30  ;;  %v548_v38 = vadd.f32 %v547_v35, %v203_v26  ;;  %v1488_v30 = vld [vmem:[#allocation11 + $0x20] sm:$0xff]  ;;  %v1486_v32 = vld [vmem:[#allocation11 + $0x10] sm:$0xff] }
  0xc8   :  { %v587_v33 = vpop.f32.mrf.mxu3  ;;  %973 = vmatpush.bf16.msra.mxu3 %v1488_v30 }
  0xc9   :  { %v561_v36 = vpop.f32.mrf.mxu1  ;;  %v588_v40 = vadd.f32 %v587_v33, %v574_v34  ;;  %v1485_v33 = vld [vmem:[#allocation11 + $0x8] sm:$0xff]  ;;  %v1484_v34 = vld [vmem:[#allocation11] sm:$0xff] }
  0xca   :  { %v562_v39 = vadd.f32 %v561_v36, %v548_v38  ;;  %v1511_v36 = vld [vmem:[%s1838_s6] ss:$0 sm:$0xff] }
  0xcb   :  { %1513 = vtanh.f32 %v588_v40 }
  0xcc   :  { %974 = vmatpush.bf16.msra.mxu3 %v1487_v31 }
  0xce   :  { %v575_v42 = vpop.f32.mrf.mxu2 }
  0xcf   :  { %v576_v43 = vadd.f32 %v575_v42, %v562_v39 }
  0xd0   :  { %v589_v44 = vpop.f32.mrf.mxu3  ;;  %975 = vmatpush.bf16.msra.mxu3 %v1486_v32 }
  0xd1   :  { %v590_v45 = vadd.f32 %v589_v44, %v576_v43  ;;  %v1514_v48 = vpop.eup %1513  ;;  %v1512_v44 = vld [vmem:[%s1840_s8] ss:$0 sm:$0xff] }
  0xd3   :  { %1515 = vtanh.f32 %v590_v45 }
  0xd4   :  { %976 = vmatpush.bf16.msra.mxu3 %v1485_v33 }
  0xd8   :  { %977 = vmatpush.bf16.msra.mxu3 %v1484_v34 }
  0xd9   :  { %v1516_v49 = vpop.eup %1515 }
  0xda   :  { %v652_v50 = vpack.c.bf16 %v1516_v49, %v1514_v48 }
  0xdc   :  { %794 = vmatmul.bf16.vlgmr.msra.gmra.mxu0 %v652_v50 }
  0xde   :  { %v601_v52 = vpop.f32.mrf.mxu0 }
  0xdf   :  { %v602_v53 = vadd.f32 %v601_v52, %v204_v51 }
  0xe0   :  { %v615_v54 = vpop.f32.mrf.mxu1 }
  0xe1   :  { %v616_v55 = vadd.f32 %v615_v54, %v602_v53 }
  0xe6   :  { %v629_v57 = vpop.f32.mrf.mxu2  ;;  %v603_v59 = vpop.f32.mrf.mxu0 }
  0xe7   :  { %v604_v60 = vadd.f32 %v603_v59, %v204_v51  ;;  %v630_v62 = vadd.f32 %v629_v57, %v616_v55 }
  0xe8   :  { %v643_v58 = vpop.f32.mrf.mxu3  ;;  %v617_v63 = vpop.f32.mrf.mxu1 }
  0xe9   :  { %v618_v2 = vadd.f32 %v617_v63, %v604_v60  ;;  %v644_v3 = vadd.f32 %v643_v58, %v630_v62 }
  0xeb   :  { %1517 = vtanh.f32 %v644_v3 }
  0xee   :  { %v631_v4 = vpop.f32.mrf.mxu2 }
  0xef   :  { %v632_v5 = vadd.f32 %v631_v4, %v618_v2 }
  0xf0   :  { %v645_v6 = vpop.f32.mrf.mxu3 }
  0xf1   :  { %v646_v7 = vadd.f32 %v645_v6, %v632_v5  ;;  %v1518_v8 = vpop.eup %1517 }
  0xf3   :  { %1519 = vtanh.f32 %v646_v7 }
  0xf9   :  { %v1520_v9 = vpop.eup %1519 }
  0xfa   :  { %v653_v10 = vpack.c.bf16 %v1520_v9, %v1518_v8 }
  0xfc   :  { %808 = vmatmul.bf16.vlgmr.msra.gmra.mxu1 %v653_v10 }
 0x159   :  { %v795_v21 = vpop.f32.mrf.mxu0 }
 0x15a   :  { %v796_v25 = vadd.f32 %v1510_v23, %v795_v21 }
 0x161   :  { %v797_v61 = vpop.f32.mrf.mxu0 }
 0x162   :  { %v798_v56 = vadd.f32 %v1510_v23, %v797_v61 }
 0x179   :  { %v809_v24 = vpop.f32.mrf.mxu1 }
 0x17a   :  { %v810_v0 = vadd.f32 %v809_v24, %v796_v25 }
 0x17c   :  { %1521 = vtanh.f32 %v810_v0 }
 0x181   :  { %v811_v26 = vpop.f32.mrf.mxu1 }
 0x182   :  { %v812_v1 = vadd.f32 %v811_v26, %v798_v56  ;;  %v1522_v27 = vpop.eup %1521 }
 0x184   :  { %1523 = vtanh.f32 %v812_v1 }
 0x18a   :  { %v1524_v28 = vpop.eup %1523 }
 0x18b   :  { %v816_v29 = vpack.c.bf16 %v1524_v28, %v1522_v27 }
 0x18d   :  { %893 = vmatmul.bf16.vlgmr.msra.gmra.mxu2 %v816_v29 }
 0x210   :  { %v894_v35 = vpop.f32.mrf.mxu2 }
 0x211   :  { %v895_v37 = vadd.f32 %v1511_v36, %v894_v35 }
 0x213   :  { %1525 = vtanh.f32 %v895_v37 }
 0x218   :  { %v896_v38 = vpop.f32.mrf.mxu2 }
 0x219   :  { %v897_v39 = vadd.f32 %v1511_v36, %v896_v38  ;;  %v1526_v40 = vpop.eup %1525 }
 0x21b   :  { %1527 = vtanh.f32 %v897_v39 }
 0x221   :  { %v1528_v41 = vpop.eup %1527 }
 0x222   :  { %v901_v42 = vpack.c.bf16 %v1528_v41, %v1526_v40 }
 0x224   :  { %978 = vmatmul.bf16.vlgmr.msra.gmra.mxu3 %v901_v42 }
 0x2a7   :  { %v979_v43 = vpop.f32.mrf.mxu3 }
 0x2a8   :  { %v980_v46 = vadd.f32 %v1512_v44, %v979_v43 }
 0x2af   :  { %v981_v45 = vpop.f32.mrf.mxu3 }
 0x2b0   :  { %v982_v47 = vadd.f32 %v1512_v44, %v981_v45 }
 0x2b2   :  { %v1495_v48 = vpack.c.bf16 %v982_v47, %v980_v46 }
 0x2b4   :  { %1496 = vst [vmem:[#allocation13] sm:$0xff] %v1495_v48  }
 0x2b5   :  { %991 = vsyncadd [#allocation4], 64  ;;  %s994_s25 = sshll.u32 %s1841_s9, 4  ;;  %s1719_s3 = smov [#allocation13]   ;;  %s995_s25 = int_to_ptr.hbm [resolvable:$true] %s994_s25 }
 0x2b6   :  { %s992_s26 = sshll.u32 %s1719_s3, 4  ;;  %s993_s26 = int_to_ptr.vmem [resolvable:$true] %s992_s26 }
 0x2b7   :  { %1000 = dma.vmem_to_hbm [thread:$0]  %s993_s26, 64, %s995_s25, [#allocation4], %s1711_s21, %s1711_s21, %s1712_s22  }
 0x2b8   :  { %1705 = dma.done.wait [#allocation4], 128  }
 0x2b9   :  { %1706 = vsyncadd [#allocation4], 4294967168 }
 0x2ba   :  { %1005 = vsyncpa [#allocation3], 1 }
 0x2bb   :  { %1006 = vsyncpa [#allocation6], 1 }
 0x2bc   :  { %1007 = vsyncpa [#allocation9], 1 }
 0x2bd   :  { %1008 = vsyncpa [#allocation12], 1 }
 0x2be   :  { %1009 = vsyncpa [#allocation4], 1 }

</bundles_post_ra>
